<compile_context>
chip_gen: v5e
topology: v5e:2x2
jax: 0.10.0
libtpu: 0.0.40
codegen_flags: <defaults>
</compile_context>

<pallas_src>
import math

import jax
import jax.numpy as jnp
from jax.experimental import pallas as pl
from jax.experimental.pallas import tpu as pltpu


def _round_up(x, m):
    return ((x + m - 1) // m) * m


def _make_kernel(n_enc):
    """Builds the fused kernel for `n_enc` (Linear+ReLU) blocks + z_layer Linear."""

    def kernel(*refs):
        x_ref = refs[0]
        z_ref = refs[-1]
        h = x_ref[...]  # f32 [tb, in_dim]

        # encoder: (Linear + ReLU) x n_enc, all intermediates stay in VMEM/vregs.
        for i in range(n_enc):
            w_ref = refs[1 + 2 * i]
            b_ref = refs[2 + 2 * i]
            h = jnp.dot(h, w_ref[...], preferred_element_type=jnp.float32) + b_ref[...]
            h = jnp.maximum(h, 0.0)

        # z_layer: Linear, no activation; minimal-width (unpadded) output store.
        wz_ref = refs[1 + 2 * n_enc]
        bz_ref = refs[2 + 2 * n_enc]
        z = jnp.dot(h, wz_ref[...], preferred_element_type=jnp.float32) + bz_ref[...]
        z_ref[...] = z.astype(z_ref.dtype)

    return kernel


def encoder_rnn_forward(x, params, *, block_batch=4096):
    """Fused EncoderRNN forward via a batch-gridded pallas_call.

    params = (w0, b0, w1, b1, ..., wz, bz) with weights stored [in, out].
    """
    batch, in_dim = x.shape
    n_enc = len(params) // 2 - 1
    out_dim = params[-2].shape[1]

    # Batch tile: multiple of 8 sublanes; aim for >= 2 grid steps so the
    # "parallel" batch axis can shard across both TensorCores on v7x.
    tb = min(block_batch, max(8, _round_up(pl.cdiv(batch, 2), 8)))
    grid = (pl.cdiv(batch, tb),)

    # Right-sized VMEM budget (accounts for (8,128) lane padding of narrow dims).
    def padded_bytes(r, c, itemsize=4):
        return _round_up(r, 8) * _round_up(c, 128) * itemsize

    vmem = 2 * padded_bytes(tb, in_dim) + 2 * padded_bytes(tb, out_dim)  # x/z, 2x buffered
    prev = in_dim
    for w in params[::2]:
        d = w.shape[1]
        vmem += padded_bytes(tb, d)            # intermediate activation
        vmem += 2 * padded_bytes(prev, d)      # weight (double-buffered worst case)
        vmem += 2 * padded_bytes(1, d)         # bias
        prev = d
    vmem = min(vmem + (8 << 20), 48 << 20)     # scratch margin; cap < v7x 64 MiB

    def resident(shape):
        # Same block every grid step -> fetched once, stays VMEM-resident.
        return pl.BlockSpec(shape, lambda i: (0, 0))

    in_specs = [pl.BlockSpec((tb, in_dim), lambda i: (i, 0))]  # x: batch-tiled
    for w, b in zip(params[::2], params[1::2]):
        in_specs += [resident(w.shape), resident(b.shape)]

    return pl.pallas_call(
        _make_kernel(n_enc),
        out_shape=jax.ShapeDtypeStruct((batch, out_dim), jnp.float32),
        grid=grid,
        in_specs=in_specs,
        out_specs=pl.BlockSpec((tb, out_dim), lambda i: (i, 0)),
        compiler_params=pltpu.CompilerParams(
            dimension_semantics=("parallel",),   # batch axis: megacore-shardable
            vmem_limit_bytes=int(vmem),
        ),
    )(x, *params)


def init_params(key, layers):
    """Deterministic parameter init mirroring the PyTorch module.

    encoder Linear params: uniform(-0.1, 0.1)                  (init_weights())
    z_layer Linear params: uniform(-1/sqrt(in), 1/sqrt(in))    (PyTorch default)
    Weights are stored as [in, out] (transposed vs. torch's [out, in]).
    """
    n_layers = len(layers) // 2
    keys = jax.random.split(key, 2 * n_layers)
    params = []
    for i in range(n_layers - 1):
        fan_in, fan_out = layers[i], layers[i + 1]
        w = jax.random.uniform(keys[2 * i], (fan_in, fan_out),
                               minval=-0.1, maxval=0.1, dtype=jnp.float32)
        b = jax.random.uniform(keys[2 * i + 1], (1, fan_out),
                               minval=-0.1, maxval=0.1, dtype=jnp.float32)
        params += [w, b]
    fan_in, fan_out = layers[n_layers - 1], layers[n_layers]
    bound = 1.0 / math.sqrt(fan_in)
    wz = jax.random.uniform(keys[-2], (fan_in, fan_out),
                            minval=-bound, maxval=bound, dtype=jnp.float32)
    bz = jax.random.uniform(keys[-1], (1, fan_out),
                            minval=-bound, maxval=bound, dtype=jnp.float32)
    params += [wz, bz]
    return tuple(params)


def reference_forward(x, params):
    """Pure-JAX f32 reference for correctness check."""
    n_enc = len(params) // 2 - 1
    h = x
    for i in range(n_enc):
        h = jnp.maximum(h @ params[2 * i] + params[2 * i + 1], 0.0)
    return h @ params[-2] + params[-1]


if __name__ == "__main__":
    # layers list (autoencoder-style): only the first half + 1 are used by forward.
    layers = [16, 64, 32, 8, 32, 64]   # n_layers = 3: encoder 16->64->32, z_layer 32->8
    batch = 8
    input_size = layers[0]

    key = jax.random.PRNGKey(0)
    pkey, xkey = jax.random.split(key)
    params = init_params(pkey, layers)
    x = jax.random.normal(xkey, (batch, input_size), dtype=jnp.float32)

    z = encoder_rnn_forward(x, params)
    z = jax.block_until_ready(z)

    z_ref = reference_forward(x, params)
    assert z.shape == (batch, layers[len(layers) // 2])
    # Full f32 path; loose-ish tolerance only to absorb MXU default-precision
    # (bf16-pass) accumulation differences vs. the XLA reference.
    assert jnp.allclose(z, z_ref, atol=2e-2, rtol=2e-2), "mismatch vs reference"

    print("KERNEL_OK")
</pallas_src>

<mosaic_0001>
module attributes {stable_mosaic.version = 11 : i64} {
  func.func @kernel(%arg0: i32, %arg1: memref<8x16xf32, #tpu.memory_space<vmem>>, %arg2: memref<16x64xf32, #tpu.memory_space<vmem>>, %arg3: memref<1x64xf32, #tpu.memory_space<vmem>>, %arg4: memref<64x32xf32, #tpu.memory_space<vmem>>, %arg5: memref<1x32xf32, #tpu.memory_space<vmem>>, %arg6: memref<32x8xf32, #tpu.memory_space<vmem>>, %arg7: memref<1x8xf32, #tpu.memory_space<vmem>>, %arg8: memref<8x8xf32, #tpu.memory_space<vmem>>) attributes {dimension_semantics = [#tpu.dimension_semantics<parallel>], iteration_bounds = array<i64: 1>, scalar_prefetch = 0 : i64, scratch_operands = 0 : i64, tpu.core_type = #tpu.core_type<tc>, window_params = [{transform_indices = @transform_0, window_bounds = array<i64: 8, 16>}, {pipeline_mode = #tpu.pipeline_mode<synchronous>, transform_indices = @transform_1, window_bounds = array<i64: 16, 64>}, {pipeline_mode = #tpu.pipeline_mode<synchronous>, transform_indices = @transform_2, window_bounds = array<i64: 1, 64>}, {pipeline_mode = #tpu.pipeline_mode<synchronous>, transform_indices = @transform_3, window_bounds = array<i64: 64, 32>}, {pipeline_mode = #tpu.pipeline_mode<synchronous>, transform_indices = @transform_4, window_bounds = array<i64: 1, 32>}, {pipeline_mode = #tpu.pipeline_mode<synchronous>, transform_indices = @transform_5, window_bounds = array<i64: 32, 8>}, {pipeline_mode = #tpu.pipeline_mode<synchronous>, transform_indices = @transform_6, window_bounds = array<i64: 1, 8>}, {transform_indices = @transform_7, window_bounds = array<i64: 8, 8>}]} {
    %c0 = arith.constant 0 : index
    %c0_0 = arith.constant 0 : index
    %0 = vector.load %arg1[%c0, %c0_0] : memref<8x16xf32, #tpu.memory_space<vmem>>, vector<8x16xf32>
    %c0_1 = arith.constant 0 : index
    %c0_2 = arith.constant 0 : index
    %1 = vector.load %arg2[%c0_1, %c0_2] : memref<16x64xf32, #tpu.memory_space<vmem>>, vector<16x64xf32>
    %cst = arith.constant dense<0.000000e+00> : vector<8x64xf32>
    %2 = tpu.matmul %0, %1, %cst {dimension_numbers = #tpu.dot_dimension_numbers<[1], [0], [0], [1], [0, 0, 1, 1], [], []>} : vector<8x16xf32>, vector<16x64xf32>, vector<8x64xf32> -> vector<8x64xf32>
    %c0_3 = arith.constant 0 : index
    %c0_4 = arith.constant 0 : index
    %3 = vector.load %arg3[%c0_3, %c0_4] : memref<1x64xf32, #tpu.memory_space<vmem>>, vector<1x64xf32>
    %4 = vector.broadcast %3 : vector<1x64xf32> to vector<8x64xf32>
    %5 = arith.addf %2, %4 : vector<8x64xf32>
    %cst_5 = arith.constant 0.000000e+00 : f32
    %6 = vector.broadcast %cst_5 : f32 to vector<8x64xf32>
    %7 = arith.maximumf %5, %6 : vector<8x64xf32>
    %c0_6 = arith.constant 0 : index
    %c0_7 = arith.constant 0 : index
    %8 = vector.load %arg4[%c0_6, %c0_7] : memref<64x32xf32, #tpu.memory_space<vmem>>, vector<64x32xf32>
    %cst_8 = arith.constant dense<0.000000e+00> : vector<8x32xf32>
    %9 = tpu.matmul %7, %8, %cst_8 {dimension_numbers = #tpu.dot_dimension_numbers<[1], [0], [0], [1], [0, 0, 1, 1], [], []>} : vector<8x64xf32>, vector<64x32xf32>, vector<8x32xf32> -> vector<8x32xf32>
    %c0_9 = arith.constant 0 : index
    %c0_10 = arith.constant 0 : index
    %10 = vector.load %arg5[%c0_9, %c0_10] : memref<1x32xf32, #tpu.memory_space<vmem>>, vector<1x32xf32>
    %11 = vector.broadcast %10 : vector<1x32xf32> to vector<8x32xf32>
    %12 = arith.addf %9, %11 : vector<8x32xf32>
    %cst_11 = arith.constant 0.000000e+00 : f32
    %13 = vector.broadcast %cst_11 : f32 to vector<8x32xf32>
    %14 = arith.maximumf %12, %13 : vector<8x32xf32>
    %c0_12 = arith.constant 0 : index
    %c0_13 = arith.constant 0 : index
    %15 = vector.load %arg6[%c0_12, %c0_13] : memref<32x8xf32, #tpu.memory_space<vmem>>, vector<32x8xf32>
    %cst_14 = arith.constant dense<0.000000e+00> : vector<8x8xf32>
    %16 = tpu.matmul %14, %15, %cst_14 {dimension_numbers = #tpu.dot_dimension_numbers<[1], [0], [0], [1], [0, 0, 1, 1], [], []>} : vector<8x32xf32>, vector<32x8xf32>, vector<8x8xf32> -> vector<8x8xf32>
    %c0_15 = arith.constant 0 : index
    %c0_16 = arith.constant 0 : index
    %17 = vector.load %arg7[%c0_15, %c0_16] : memref<1x8xf32, #tpu.memory_space<vmem>>, vector<1x8xf32>
    %18 = vector.broadcast %17 : vector<1x8xf32> to vector<8x8xf32>
    %19 = arith.addf %16, %18 : vector<8x8xf32>
    %c0_17 = arith.constant 0 : index
    %c0_18 = arith.constant 0 : index
    %20 = vector.load %arg8[%c0_17, %c0_18] : memref<8x8xf32, #tpu.memory_space<vmem>>, vector<8x8xf32>
    tpu.vector_store %arg8[%c0_17, %c0_18], %19 {strides = array<i32>} : memref<8x8xf32, #tpu.memory_space<vmem>>, vector<8x8xf32>,
    return
  }
  func.func @transform_0(%arg0: i32) -> (i32, i32) {
    %c0_i32 = arith.constant 0 : i32
    %c0_i32_0 = arith.constant 0 : i32
    return %arg0, %c0_i32 : i32, i32
  }
  func.func @transform_1(%arg0: i32) -> (i32, i32) {
    %c0_i32 = arith.constant 0 : i32
    %c0_i32_0 = arith.constant 0 : i32
    %c0_i32_1 = arith.constant 0 : i32
    return %c0_i32, %c0_i32_0 : i32, i32
  }
  func.func @transform_2(%arg0: i32) -> (i32, i32) {
    %c0_i32 = arith.constant 0 : i32
    %c0_i32_0 = arith.constant 0 : i32
    %c0_i32_1 = arith.constant 0 : i32
    return %c0_i32, %c0_i32_0 : i32, i32
  }
  func.func @transform_3(%arg0: i32) -> (i32, i32) {
    %c0_i32 = arith.constant 0 : i32
    %c0_i32_0 = arith.constant 0 : i32
    %c0_i32_1 = arith.constant 0 : i32
    return %c0_i32, %c0_i32_0 : i32, i32
  }
  func.func @transform_4(%arg0: i32) -> (i32, i32) {
    %c0_i32 = arith.constant 0 : i32
    %c0_i32_0 = arith.constant 0 : i32
    %c0_i32_1 = arith.constant 0 : i32
    return %c0_i32, %c0_i32_0 : i32, i32
  }
  func.func @transform_5(%arg0: i32) -> (i32, i32) {
    %c0_i32 = arith.constant 0 : i32
    %c0_i32_0 = arith.constant 0 : i32
    %c0_i32_1 = arith.constant 0 : i32
    return %c0_i32, %c0_i32_0 : i32, i32
  }
  func.func @transform_6(%arg0: i32) -> (i32, i32) {
    %c0_i32 = arith.constant 0 : i32
    %c0_i32_0 = arith.constant 0 : i32
    %c0_i32_1 = arith.constant 0 : i32
    return %c0_i32, %c0_i32_0 : i32, i32
  }
  func.func @transform_7(%arg0: i32) -> (i32, i32) {
    %c0_i32 = arith.constant 0 : i32
    %c0_i32_0 = arith.constant 0 : i32
    return %arg0, %c0_i32 : i32, i32
  }
}

</mosaic_0001>

<bundles_post_ra>
// kernel: tpu_custom_call.1
= control target key start
LH: loop header
LB: loop body
LE: loop exit
PB: predicated region body
PF: predicated region fallthrough
CT: control target
= control target key end

     0   :  { %vm34_vm0 = vcmask 130048   ;;  %s277_s0 = inlined_call_operand.vmem [shape: f32[8,16], index: 0, kind: input, shape index: {}]   ;;  %s278_s1 = inlined_call_operand.vmem [shape: f32[16,64], index: 1, kind: input, shape index: {}]   ;;  %s279_s2 = inlined_call_operand.vmem [shape: f32[1,64], index: 2, kind: input, shape index: {}]   ;;  %s280_s3 = inlined_call_operand.vmem [shape: f32[64,32], index: 3, kind: input, shape index: {}]   ;;  %s281_s4 = inlined_call_operand.vmem [shape: f32[1,32], index: 4, kind: input, shape index: {}]   ;;  %s282_s5 = inlined_call_operand.vmem [shape: f32[32,8], index: 5, kind: input, shape index: {}]   ;;  %s283_s6 = inlined_call_operand.vmem [shape: f32[1,8], index: 6, kind: input, shape index: {}]   ;;  %s284_s7 = inlined_call_operand.hbm [shape: f32[8,8], index: 7, kind: output, shape index: {}]  }
   0x1   :  { %v29_v0 = vld [vmem:[%s278_s1 + $0x8] sm:$0xff]  ;;  %v28_v1 = vld [vmem:[%s278_s1] sm:$0xff]  ;;  %v66_v3 = vld [vmem:[%s280_s3 + $0x38] sm:$0xff] }
   0x2   :  { %52 = vmatpush.msra.mxu0 %v29_v0  ;;  %v27_v2 = vld [vmem:[%s277_s0] sm:$0xff]  ;;  %v65_v4 = vld [vmem:[%s280_s3 + $0x30] sm:$0xff]  ;;  %83 = vmatpush.msra.mxu1 %v66_v3  ;;  %v64_v5 = vld [vmem:[%s280_s3 + $0x28] sm:$0xff] }
   0x4   :  { %53 = vmatpush.msra.mxu0 %v28_v1  ;;  %84 = vmatpush.msra.mxu1 %v65_v4 }
   0x5   :  { %146 = vmatmul.msk.f32.vlgmr.msra.gmra.mxu0 %vm34_vm0, %v27_v2 }
   0x6   :  { %12 = vsyncpa [#allocation3], 0  ;;  %v63_v6 = vld [vmem:[%s280_s3 + $0x20] sm:$0xff]  ;;  %85 = vmatpush.msra.mxu1 %v64_v5  ;;  %v62_v7 = vld [vmem:[%s280_s3 + $0x18] sm:$0xff]  ;;  %vm71_vm1 = vcmask 523264   ;;  %vm104_vm2 = vcmask 261120  }
   0x7   :  { %v61_v8 = vld [vmem:[%s280_s3 + $0x10] sm:$0xff]  ;;  %v60_v9 = vld [vmem:[%s280_s3 + $0x8] sm:$0xff]  ;;  %v59_v10 = vld [vmem:[%s280_s3] sm:$0xff]  ;;  %s179_s10 = smov [#allocation2]   ;;  %vm128_vm3 = vcmask 64512  }
   0x8   :  { %86 = vmatpush.msra.mxu1 %v63_v6  ;;  %v99_v11 = vld [vmem:[%s282_s5 + $0x18] sm:$0xff]  ;;  %v150_v12 = vld [vmem:[%s279_s2] ss:$0 sm:$0xff]  ;;  %v98_v16 = vld [vmem:[%s282_s5 + $0x10] sm:$0xff]  ;;  %s135_s11 = sshll.u32 %s179_s10, 4  ;;  %s136_s11 = int_to_ptr.vmem [resolvable:$true] %s135_s11 }
   0x9   :  { %120 = vmatpush.msra.mxu2 %v99_v11  ;;  %v97_v17 = vld [vmem:[%s282_s5 + $0x8] sm:$0xff]  ;;  %v96_v18 = vld [vmem:[%s282_s5] sm:$0xff]  ;;  %s137_s5 = sshll.u32 %s284_s7, 4  ;;  %s138_s5 = int_to_ptr.hbm [resolvable:$true] %s137_s5 }
   0xa   :  { %87 = vmatpush.msra.mxu1 %v62_v7  ;;  %v151_v19 = vld [vmem:[%s281_s4] ss:$0 sm:$0xff] }
   0xb   :  { %121 = vmatpush.msra.mxu2 %v98_v16  ;;  %v152_v23 = vld [vmem:[%s283_s6] ss:$0 sm:$0xff] }
   0xc   :  { %88 = vmatpush.msra.mxu1 %v61_v8 }
   0xd   :  { %122 = vmatpush.msra.mxu2 %v97_v17 }
   0xe   :  { %89 = vmatpush.msra.mxu1 %v60_v9 }
   0xf   :  { %123 = vmatpush.msra.mxu2 %v96_v18 }
  0x10   :  { %90 = vmatpush.msra.mxu1 %v59_v10 }
  0x82   :  { %v55_v13 = vpop.f32.mrf.mxu0 }
  0x83   :  { %v56_v14 = vadd.f32 %v150_v12, %v55_v13 }
  0x85   :  { %v58_v15 = vmax.f32 %v56_v14, 0.0 }
  0x87   :  { %147 = vmatmul.msk.f32.vlgmr.msra.gmra.mxu1 %vm71_vm1, %v58_v15 }
 0x104   :  { %v92_v20 = vpop.f32.mrf.mxu1 }
 0x105   :  { %v93_v21 = vadd.f32 %v151_v19, %v92_v20 }
 0x107   :  { %v95_v22 = vmax.f32 %v93_v21, 0.0 }
 0x109   :  { %148 = vmatmul.msk.f32.vlgmr.msra.gmra.mxu2 %vm104_vm2, %v95_v22 }
 0x18c   :  { %v125_v24 = vpop.f32.mrf.mxu2 }
 0x18d   :  { %v126_v25 = vadd.f32 %v152_v23, %v125_v24 }
 0x18f   :  { %129 = vst.msk [vmem:[#allocation2] sm:$0xff] %vm128_vm3, %v126_v25 }
 0x190   :  { %140 = dma.vmem_to_hbm [thread:$0]  %s136_s11, 128, %s138_s5, [#allocation3]  }
 0x191   :  { %177 = dma.done.wait [#allocation3], 128  }
 0x192   :  { %178 = vsyncadd [#allocation3], 4294967168 }
 0x193   :  { %145 = vsyncpa [#allocation3], 1 }

</bundles_post_ra>
